<compile_context>
chip_gen: v5e
topology: v5e:2x2
jax: 0.10.0
libtpu: 0.0.40
codegen_flags: <defaults>
</compile_context>

<pallas_src>
import math

import jax
import jax.numpy as jnp
import numpy as np
from jax.experimental import pallas as pl
from jax.experimental.pallas import tpu as pltpu


def _round_up(x, m):
    return ((x + m - 1) // m) * m


def _pick_tile_m(M, max_tm=1024):
    """Pick the M tile so the grid is as small as possible (step-overhead bound) and,
    when M is large enough, an even number of tiles >= 2 (v7x megacore balance)."""
    M16 = _round_up(max(M, 16), 16)
    if M16 <= 32:
        return M16, M16                                  # single tiny tile
    if M16 <= 2 * max_tm:
        tm = _round_up((M16 + 1) // 2, 16)               # exactly two balanced tiles
    else:
        n_tiles = 2 * (-(-M16 // (2 * max_tm)))          # smallest even count, tm <= max_tm
        tm = _round_up(-(-M16 // n_tiles), 16)
    return tm, _round_up(M16, tm)


# ---------------------------------------------------------------------------
# Fused Pallas kernel: y = x_packed @ W_blockdiag + bias_row
#   x_ref: (tm, K_pad)    bf16   (tiled over M, auto-pipelined)
#   w_ref: (K_pad, N_pad) bf16   (pre-transposed block-diagonal, VMEM-resident)
#   b_ref: (1, N_pad)     f32    (VMEM-resident)
#   o_ref: (tm, N_pad)    bf16   (lane-dense, unmasked stores)
# ---------------------------------------------------------------------------
def _so3_fused_kernel(x_ref, w_ref, b_ref, o_ref):
    acc = jnp.dot(x_ref[...], w_ref[...], preferred_element_type=jnp.float32)
    o_ref[...] = (acc + b_ref[...]).astype(o_ref.dtype)


def _so3_fused_matmul(x_packed, w_packed, bias_row, tm, out_dtype):
    M_pad, K_pad = x_packed.shape
    K_pad2, N_pad = w_packed.shape
    assert K_pad == K_pad2 and M_pad % tm == 0
    grid = (M_pad // tm,)
    return pl.pallas_call(
        _so3_fused_kernel,
        out_shape=jax.ShapeDtypeStruct((M_pad, N_pad), out_dtype),
        grid_spec=pltpu.PrefetchScalarGridSpec(
            num_scalar_prefetch=0,
            grid=grid,
            in_specs=[
                pl.BlockSpec((tm, K_pad), lambda i: (i, 0)),      # activations: tiled over M
                pl.BlockSpec((K_pad, N_pad), lambda i: (0, 0)),   # weight: resident
                pl.BlockSpec((1, N_pad), lambda i: (0, 0)),       # bias row: resident
            ],
            out_specs=pl.BlockSpec((tm, N_pad), lambda i: (i, 0)),
        ),
        compiler_params=pltpu.CompilerParams(
            dimension_semantics=("parallel",),       # independent M tiles -> 2 TCs on v7x
            vmem_limit_bytes=32 * 1024 * 1024,       # guardrail; actual usage is ~1-2 MiB
        ),
    )(x_packed, w_packed, bias_row)


# ---------------------------------------------------------------------------
# SO3_Linear re-implementation. Parameter packing + layout glue in plain JAX,
# the whole (all l-blocks) matmul + bias in one Pallas kernel.
# ---------------------------------------------------------------------------
class SO3LinearPallas:
    def __init__(self, in_irreps, out_irreps, bias=True, *, key,
                 dtype=jnp.float32, compute_dtype=jnp.bfloat16, max_tile_m=1024):
        # in_irreps / out_irreps: list of (mul, l) tuples, e.g. [(8,0),(8,0),(8,1)]
        self.mul_in = in_irreps[0][0]
        self.mul_out = out_irreps[0][0]
        assert all(m == self.mul_in for m, _ in in_irreps)
        assert all(m == self.mul_out for m, _ in out_irreps)
        self.dtype = dtype
        self.compute_dtype = compute_dtype
        self.max_tile_m = max_tile_m

        out_ls = sorted(set(l for _, l in out_irreps))
        in_ls = set(l for _, l in in_irreps)
        # The reference module walks the input feature axis assuming it is grouped by
        # the output l's; an unmatched input l would silently misalign the offsets.
        assert in_ls.issubset(set(out_ls)), \
            f"input ls {sorted(in_ls)} must be a subset of output ls {out_ls}"

        self.blocks = []
        for l in out_ls:
            n_in = sum(1 for _, li in in_irreps if li == l)
            n_out = sum(1 for _, lo in out_irreps if lo == l)
            assert n_in > 0, f"output l={l} has no matching input irreps"
            in_features = self.mul_in * n_in
            out_features = self.mul_out * n_out
            bound = 1.0 / math.sqrt(in_features)
            key, wk = jax.random.split(key)
            w = jax.random.uniform(wk, (out_features, in_features), dtype=jnp.float32,
                                   minval=-bound, maxval=bound)
            # Round the weights through the compute dtype once so the kernel and the
            # f32 reference see numerically identical parameter values.
            w = w.astype(compute_dtype).astype(jnp.float32)
            self.blocks.append(dict(
                l=l, dl=2 * l + 1, n_in=n_in, n_out=n_out,
                K=in_features, N=out_features, weight=w,
                in_length=n_in * (2 * l + 1),
            ))

        self.K_total = sum(b["K"] for b in self.blocks)
        self.N_total = sum(b["N"] for b in self.blocks)
        self.K_pad = _round_up(self.K_total, 16)    # bf16 sublane packing of W
        self.N_pad = _round_up(self.N_total, 128)   # lane-dense (unmasked) output stores
        self.d_in = sum(b["in_length"] for b in self.blocks)
        self.d_out = sum(b["n_out"] * b["dl"] for b in self.blocks)
        self.rows_per_batch = sum(b["dl"] for b in self.blocks)

        # Block-diagonal, pre-transposed weight (K_pad, N_pad); built once at init.
        w_packed = np.zeros((self.K_pad, self.N_pad), dtype=np.float32)
        k_off = n_off = 0
        for b in self.blocks:
            b["k_off"], b["n_off"] = k_off, n_off
            w_packed[k_off:k_off + b["K"], n_off:n_off + b["N"]] = np.asarray(b["weight"]).T
            k_off += b["K"]
            n_off += b["N"]
        self.w_packed = jnp.asarray(w_packed, dtype=compute_dtype)

        # Bias only for the l==0 scalar block (module init is zeros; use a small
        # deterministic random bias so the bias path is actually exercised).
        # NOTE: the kernel adds this row to every packed row; correctness relies on
        # the unpack discarding the non-l=0 columns / padding rows (see header).
        bias_row = np.zeros((1, self.N_pad), dtype=np.float32)
        self.scalars = 0
        self.has_bias = False
        self.bias_mo = None
        if bias:
            for b in self.blocks:
                if b["l"] == 0:
                    key, bk = jax.random.split(key)
                    self.bias_mo = 0.1 * jax.random.normal(
                        bk, (self.mul_out, b["n_out"]), dtype=jnp.float32)
                    self.scalars = b["n_out"]
                    self.has_bias = True
                    # '(m o)' flattening matches the pre-rearrange column layout.
                    bias_row[0, b["n_off"]:b["n_off"] + b["N"]] = \
                        np.asarray(self.bias_mo).reshape(-1)
        self.bias_row = jnp.asarray(bias_row)

    # -------------------------- forward (Pallas) ---------------------------
    def __call__(self, x):
        # x: (B, mul_in, D_in); feature axis grouped by l ascending, '(i l)' within a block.
        B, m_in, D_in = x.shape
        assert m_in == self.mul_in and D_in == self.d_in
        xc = x.astype(self.compute_dtype)

        M = B * self.rows_per_batch
        tm, M_pad = _pick_tile_m(M, self.max_tile_m)

        # ---- pack all l-blocks into one (M_pad, K_pad) slab: rows = (block, b, comp) ----
        # Static-offset in-place updates (no per-block pad + concat) so XLA fuses the
        # 'b m (i l) -> (b l)(m i)' transposes into one producing fusion. Off-block
        # columns stay zero; they only ever multiply the zero entries of the
        # block-diagonal weight, so they contribute nothing.
        x_packed = jnp.zeros((M_pad, self.K_pad), dtype=self.compute_dtype)
        in_start = 0
        row_off = 0
        for b in self.blocks:
            dl, n_in, K, k_off = b["dl"], b["n_in"], b["K"], b["k_off"]
            feat = xc[:, :, in_start:in_start + b["in_length"]]
            feat = feat.reshape(B, self.mul_in, n_in, dl)
            feat = jnp.transpose(feat, (0, 3, 1, 2)).reshape(B * dl, K)
            x_packed = x_packed.at[row_off:row_off + B * dl, k_off:k_off + K].set(feat)
            in_start += b["in_length"]
            row_off += B * dl

        # Single fused matmul + bias; kernel writes bf16 (halves the dominant writeback).
        y = _so3_fused_matmul(x_packed, self.w_packed, self.bias_row, tm,
                              self.compute_dtype)

        # ---- unpack: per-l 'b l (m o) -> b m (o l)', concat over l, cast up once ----
        outs = []
        row_off = 0
        for b in self.blocks:
            dl, n_out, N, n_off = b["dl"], b["n_out"], b["N"], b["n_off"]
            yb = y[row_off:row_off + B * dl, n_off:n_off + N]
            yb = yb.reshape(B, dl, self.mul_out, n_out)
            yb = jnp.transpose(yb, (0, 2, 3, 1)).reshape(B, self.mul_out, n_out * dl)
            outs.append(yb)
            row_off += B * dl
        return jnp.concatenate(outs, axis=-1).astype(self.dtype)

    # ----------------- pure-JAX reference (PyTorch semantics) --------------
    def reference(self, x):
        # Same math as SO3_Linear.forward, in f32. Input is rounded through the
        # compute dtype exactly like the kernel path so comparisons are tight.
        xr = x.astype(self.compute_dtype).astype(jnp.float32)
        B = xr.shape[0]
        outs = []
        start = 0
        for b in self.blocks:
            dl, n_in, n_out = b["dl"], b["n_in"], b["n_out"]
            feat = xr[:, :, start:start + b["in_length"]]
            feat = feat.reshape(B, self.mul_in, n_in, dl)
            feat = jnp.transpose(feat, (0, 3, 1, 2)).reshape(B, dl, self.mul_in * n_in)
            y = jnp.einsum("bli,oi->blo", feat, b["weight"])
            y = y.reshape(B, dl, self.mul_out, n_out)
            y = jnp.transpose(y, (0, 2, 3, 1)).reshape(B, self.mul_out, n_out * dl)
            outs.append(y)
            start += b["in_length"]
        out = jnp.concatenate(outs, axis=-1)
        if self.has_bias:
            out = out.at[..., :self.scalars].add(self.bias_mo[None])
        return out


if __name__ == "__main__":
    key = jax.random.PRNGKey(0)

    # Config 1 — module docstring example: '8x0e+8x0e+8x1o' -> '8x0e+8x1o+8x1o'
    in_irreps = [(8, 0), (8, 0), (8, 1)]
    out_irreps = [(8, 0), (8, 1), (8, 1)]
    key, pk, xk = jax.random.split(key, 3)
    layer = SO3LinearPallas(in_irreps, out_irreps, bias=True, key=pk)

    batch = 128                                   # M = 128 * (1 + 3) = 512 -> 2 tiles of 256
    d_in = sum(2 * l + 1 for _, l in in_irreps)   # 5
    x = jax.random.normal(xk, (batch, 8, d_in), dtype=jnp.float32)

    fwd = jax.jit(layer.__call__)
    out = jax.block_until_ready(fwd(x))
    ref = layer.reference(x)
    d_out = sum(2 * l + 1 for _, l in out_irreps)  # 7
    assert out.shape == (batch, 8, d_out), out.shape
    # Kernel writes bf16 output -> compare at bf16-level tolerance.
    np.testing.assert_allclose(np.asarray(out), np.asarray(ref), rtol=2e-2, atol=2e-2)

    # Config 2 — l = 0,1,2 with different irrep counts per side (small, ragged M).
    in_irreps2 = [(4, 0), (4, 1), (4, 1), (4, 2)]
    out_irreps2 = [(4, 0), (4, 0), (4, 1), (4, 2), (4, 2)]
    key, pk2, xk2 = jax.random.split(key, 3)
    layer2 = SO3LinearPallas(in_irreps2, out_irreps2, bias=True, key=pk2)
    d_in2 = sum(2 * l + 1 for _, l in in_irreps2)    # 12
    x2 = jax.random.normal(xk2, (8, 4, d_in2), dtype=jnp.float32)
    out2 = jax.block_until_ready(jax.jit(layer2.__call__)(x2))
    ref2 = layer2.reference(x2)
    d_out2 = sum(2 * l + 1 for _, l in out_irreps2)  # 15
    assert out2.shape == (8, 4, d_out2), out2.shape
    np.testing.assert_allclose(np.asarray(out2), np.asarray(ref2), rtol=2e-2, atol=2e-2)

    print("KERNEL_OK")
</pallas_src>

<mosaic_0001>
module attributes {stable_mosaic.version = 11 : i64} {
  func.func @_so3_fused_kernel(%arg0: i32, %arg1: memref<256x32xbf16, #tpu.memory_space<vmem>>, %arg2: memref<32x128xbf16, #tpu.memory_space<vmem>>, %arg3: memref<1x128xf32, #tpu.memory_space<vmem>>, %arg4: memref<256x128xbf16, #tpu.memory_space<vmem>>) attributes {dimension_semantics = [#tpu.dimension_semantics<parallel>], iteration_bounds = array<i64: 2>, scalar_prefetch = 0 : i64, scratch_operands = 0 : i64, tpu.core_type = #tpu.core_type<tc>, window_params = [{transform_indices = @transform_0, window_bounds = array<i64: 256, 32>}, {pipeline_mode = #tpu.pipeline_mode<synchronous>, transform_indices = @transform_1, window_bounds = array<i64: 32, 128>}, {pipeline_mode = #tpu.pipeline_mode<synchronous>, transform_indices = @transform_2, window_bounds = array<i64: 1, 128>}, {transform_indices = @transform_3, window_bounds = array<i64: 256, 128>}]} {
    %c0 = arith.constant 0 : index
    %c0_0 = arith.constant 0 : index
    %0 = vector.load %arg1[%c0, %c0_0] : memref<256x32xbf16, #tpu.memory_space<vmem>>, vector<256x32xbf16>
    %c0_1 = arith.constant 0 : index
    %c0_2 = arith.constant 0 : index
    %1 = vector.load %arg2[%c0_1, %c0_2] : memref<32x128xbf16, #tpu.memory_space<vmem>>, vector<32x128xbf16>
    %cst = arith.constant dense<0.000000e+00> : vector<256x128xf32>
    %2 = tpu.matmul %0, %1, %cst {dimension_numbers = #tpu.dot_dimension_numbers<[1], [0], [0], [1], [0, 0, 1, 1], [], []>} : vector<256x32xbf16>, vector<32x128xbf16>, vector<256x128xf32> -> vector<256x128xf32>
    %c0_3 = arith.constant 0 : index
    %c0_4 = arith.constant 0 : index
    %3 = vector.load %arg3[%c0_3, %c0_4] : memref<1x128xf32, #tpu.memory_space<vmem>>, vector<1x128xf32>
    %4 = vector.broadcast %3 : vector<1x128xf32> to vector<256x128xf32>
    %5 = arith.addf %2, %4 : vector<256x128xf32>
    %6 = arith.truncf %5 : vector<256x128xf32> to vector<256x128xbf16>
    %c0_5 = arith.constant 0 : index
    %c0_6 = arith.constant 0 : index
    %7 = vector.load %arg4[%c0_5, %c0_6] : memref<256x128xbf16, #tpu.memory_space<vmem>>, vector<256x128xbf16>
    tpu.vector_store %arg4[%c0_5, %c0_6], %6 {strides = array<i32>} : memref<256x128xbf16, #tpu.memory_space<vmem>>, vector<256x128xbf16>,
    return
  }
  func.func @transform_0(%arg0: i32) -> (i32, i32) {
    %c0_i32 = arith.constant 0 : i32
    %c0_i32_0 = arith.constant 0 : i32
    return %arg0, %c0_i32 : i32, i32
  }
  func.func @transform_1(%arg0: i32) -> (i32, i32) {
    %c0_i32 = arith.constant 0 : i32
    %c0_i32_0 = arith.constant 0 : i32
    %c0_i32_1 = arith.constant 0 : i32
    return %c0_i32, %c0_i32_0 : i32, i32
  }
  func.func @transform_2(%arg0: i32) -> (i32, i32) {
    %c0_i32 = arith.constant 0 : i32
    %c0_i32_0 = arith.constant 0 : i32
    %c0_i32_1 = arith.constant 0 : i32
    return %c0_i32, %c0_i32_0 : i32, i32
  }
  func.func @transform_3(%arg0: i32) -> (i32, i32) {
    %c0_i32 = arith.constant 0 : i32
    %c0_i32_0 = arith.constant 0 : i32
    return %arg0, %c0_i32 : i32, i32
  }
}

</mosaic_0001>

<bundles_post_ra>
// kernel: a_call__.1
= control target key start
LH: loop header
LB: loop body
LE: loop exit
PB: predicated region body
PF: predicated region fallthrough
CT: control target
= control target key end

     0   :  { %s820_s12 = smov 0   ;;  %s939_s0 = inlined_call_operand.vmem [shape: bf16[512,32], index: 0, kind: input, shape index: {}]   ;;  %s940_s1 = inlined_call_operand.vmem [shape: bf16[32,128], index: 1, kind: input, shape index: {}]   ;;  %s941_s2 = inlined_call_operand.vmem [shape: f32[1,128], index: 2, kind: input, shape index: {}]   ;;  %s942_s3 = inlined_call_operand.vmem [shape: bf16[512,128], index: 3, kind: output, shape index: {}]  }
   0x1 LB: > { %s565_s13 = sadd.s32 4294967295, %s798_s12   ;;  %p569_p0 = scmp.ge.s32.totalorder %s798_s12, 1  ;;  %s798_s12 = sphi %s820_s12, %s13_s12  }
   0x2   : > { %p138_p1 = scmp.lt.s32.totalorder %s798_s12, 3 }
   0x4   : > { %p139_p2 = pnand %p569_p0, %p138_p1 }
   0x5   : > { %s570_s16 = sshll.u32 (!%p139_p2), %s565_s13, 5 }
   0x6   : > { %142 = sbr.rel (%p139_p2) target bundleno = 214 (0xd6), region = 32  ;;  %p163_p3 = scmp.lt.s32.totalorder (!%p139_p2), %s570_s16, 63 }
   0xb   : > { %v681_v0 = vld [vmem:[%s940_s1 + $0x8] sm:$0xff]  ;;  %v680_v1 = vld [vmem:[%s940_s1] sm:$0xff]  ;;  %s944_s16 = smov (!%p163_p3, %s570_s16), 63  ;;  %vm307_vm0 = vcmask 261120  }
   0xc   : > { %362 = vmatpush.bf16.msra.mxu0 %v681_v0  ;;  %777 = vmatpush.bf16.msra.mxu1 %v681_v0  ;;  %s571_s19 = sshll.u32 %s944_s16, 2  ;;  %v879_v20 = vld [vmem:[%s941_s2] ss:$0 sm:$0xff] }
   0xd   : > { %778 = vmatpush.bf16.msra.mxu2 %v681_v0  ;;  %779 = vmatpush.bf16.msra.mxu3 %v681_v0  ;;  %s842_s22 = scalar_lea.vmem %s939_s0, %s571_s19  ;;  %s890_s27 = scalar_lea.vmem %s942_s3, %s571_s19 }
   0xe   : > { %v664_v2 = vld [vmem:[%s842_s22] sm:$0xff]  ;;  %v665_v6 = vld [vmem:[%s842_s22 + $0x8] sm:$0xff]  ;;  %v666_v10 = vld [vmem:[%s842_s22 + $0x10] sm:$0xff] }
   0xf   : > { %v668_v3 = vld [vmem:[%s842_s22 + $0x20] sm:$0xff]  ;;  %v669_v7 = vld [vmem:[%s842_s22 + $0x28] sm:$0xff]  ;;  %v670_v11 = vld [vmem:[%s842_s22 + $0x30] sm:$0xff] }
  0x10   : > { %363 = vmatpush.bf16.msra.mxu0 %v680_v1  ;;  %780 = vmatpush.bf16.msra.mxu1 %v680_v1  ;;  %v672_v4 = vld [vmem:[%s842_s22 + $0x40] sm:$0xff]  ;;  %v673_v8 = vld [vmem:[%s842_s22 + $0x48] sm:$0xff]  ;;  %v674_v12 = vld [vmem:[%s842_s22 + $0x50] sm:$0xff] }
  0x11   : > { %781 = vmatpush.bf16.msra.mxu2 %v680_v1  ;;  %782 = vmatpush.bf16.msra.mxu3 %v680_v1  ;;  %v676_v5 = vld [vmem:[%s842_s22 + $0x60] sm:$0xff]  ;;  %v677_v9 = vld [vmem:[%s842_s22 + $0x68] sm:$0xff]  ;;  %v678_v13 = vld [vmem:[%s842_s22 + $0x70] sm:$0xff] }
  0x12   : > { %v667_v14 = vld [vmem:[%s842_s22 + $0x18] sm:$0xff] }
  0x13   : > { %646 = vmatmul.msk.bf16.vlgmr.msra.gmra.mxu0 %vm307_vm0, %v664_v2  ;;  %650 = vmatmul.msk.bf16.vlgmr.msra.gmra.mxu1 %vm307_vm0, %v668_v3  ;;  %v671_v15 = vld [vmem:[%s842_s22 + $0x38] sm:$0xff] }
  0x14   : > { %654 = vmatmul.msk.bf16.vlgmr.msra.gmra.mxu2 %vm307_vm0, %v672_v4  ;;  %658 = vmatmul.msk.bf16.vlgmr.msra.gmra.mxu3 %vm307_vm0, %v676_v5  ;;  %v675_v16 = vld [vmem:[%s842_s22 + $0x58] sm:$0xff] }
  0x15   : > { %v679_v17 = vld [vmem:[%s842_s22 + $0x78] sm:$0xff] }
  0x23   : > { %647 = vmatmul.msk.bf16.gmra.mxu0 %vm307_vm0, %v665_v6  ;;  %651 = vmatmul.msk.bf16.gmra.mxu1 %vm307_vm0, %v669_v7 }
  0x24   : > { %655 = vmatmul.msk.bf16.gmra.mxu2 %vm307_vm0, %v673_v8  ;;  %659 = vmatmul.msk.bf16.gmra.mxu3 %vm307_vm0, %v677_v9 }
  0x33   : > { %648 = vmatmul.msk.bf16.gmra.mxu0 %vm307_vm0, %v666_v10  ;;  %652 = vmatmul.msk.bf16.gmra.mxu1 %vm307_vm0, %v670_v11 }
  0x34   : > { %656 = vmatmul.msk.bf16.gmra.mxu2 %vm307_vm0, %v674_v12  ;;  %660 = vmatmul.msk.bf16.gmra.mxu3 %vm307_vm0, %v678_v13 }
  0x43   : > { %649 = vmatmul.msk.bf16.gmra.mxu0 %vm307_vm0, %v667_v14  ;;  %653 = vmatmul.msk.bf16.gmra.mxu1 %vm307_vm0, %v671_v15 }
  0x44   : > { %657 = vmatmul.msk.bf16.gmra.mxu2 %vm307_vm0, %v675_v16  ;;  %661 = vmatmul.msk.bf16.gmra.mxu3 %vm307_vm0, %v679_v17 }
  0x90   : > { %v365_v18 = vpop.f32.mrf.mxu0  ;;  %v385_v19 = vpop.f32.mrf.mxu1 }
  0x91   : > { %v366_v25 = vadd.f32 %v879_v20, %v365_v18  ;;  %v386_v26 = vadd.f32 %v879_v20, %v385_v19 }
  0x97   : > { %v405_v21 = vpop.f32.mrf.mxu2  ;;  %v425_v22 = vpop.f32.mrf.mxu3 }
  0x98   : > { %v367_v23 = vpop.f32.mrf.mxu0  ;;  %v387_v24 = vpop.f32.mrf.mxu1  ;;  %v406_v33 = vadd.f32 %v879_v20, %v405_v21  ;;  %v426_v34 = vadd.f32 %v879_v20, %v425_v22 }
  0x99   : > { %v368_v27 = vadd.f32 %v879_v20, %v367_v23  ;;  %v388_v28 = vadd.f32 %v879_v20, %v387_v24 }
  0x9b   : > { %v685_v29 = vpack.c.bf16 %v368_v27, %v366_v25  ;;  %v705_v30 = vpack.c.bf16 %v388_v28, %v386_v26 }
  0x9d   : > { %686 = vst [vmem:[%s890_s27] sm:$0xff] %v685_v29  }
  0x9e   : > { %765 = vst [vmem:[%s890_s27 + $0x20] sm:$0xff] %v705_v30  }
  0x9f   : > { %v407_v31 = vpop.f32.mrf.mxu2  ;;  %v427_v32 = vpop.f32.mrf.mxu3 }
  0xa0   : > { %v408_v35 = vadd.f32 %v879_v20, %v407_v31  ;;  %v428_v36 = vadd.f32 %v879_v20, %v427_v32  ;;  %v370_v37 = vpop.f32.mrf.mxu0  ;;  %v390_v38 = vpop.f32.mrf.mxu1 }
  0xa1   : > { %v371_v45 = vadd.f32 %v879_v20, %v370_v37  ;;  %v391_v46 = vadd.f32 %v879_v20, %v390_v38 }
  0xa2   : > { %v725_v39 = vpack.c.bf16 %v408_v35, %v406_v33  ;;  %v745_v40 = vpack.c.bf16 %v428_v36, %v426_v34 }
  0xa4   : > { %769 = vst [vmem:[%s890_s27 + $0x40] sm:$0xff] %v725_v39  }
  0xa5   : > { %773 = vst [vmem:[%s890_s27 + $0x60] sm:$0xff] %v745_v40  }
  0xa7   : > { %v410_v41 = vpop.f32.mrf.mxu2  ;;  %v430_v42 = vpop.f32.mrf.mxu3 }
  0xa8   : > { %v372_v43 = vpop.f32.mrf.mxu0  ;;  %v392_v44 = vpop.f32.mrf.mxu1  ;;  %v411_v53 = vadd.f32 %v879_v20, %v410_v41  ;;  %v431_v54 = vadd.f32 %v879_v20, %v430_v42 }
  0xa9   : > { %v373_v47 = vadd.f32 %v879_v20, %v372_v43  ;;  %v393_v48 = vadd.f32 %v879_v20, %v392_v44 }
  0xab   : > { %v690_v49 = vpack.c.bf16 %v373_v47, %v371_v45  ;;  %v710_v50 = vpack.c.bf16 %v393_v48, %v391_v46 }
  0xad   : > { %762 = vst [vmem:[%s890_s27 + $0x8] sm:$0xff] %v690_v49  }
  0xae   : > { %766 = vst [vmem:[%s890_s27 + $0x28] sm:$0xff] %v710_v50  }
  0xaf   : > { %v412_v51 = vpop.f32.mrf.mxu2  ;;  %v432_v52 = vpop.f32.mrf.mxu3 }
  0xb0   : > { %v413_v55 = vadd.f32 %v879_v20, %v412_v51  ;;  %v433_v56 = vadd.f32 %v879_v20, %v432_v52  ;;  %v375_v57 = vpop.f32.mrf.mxu0  ;;  %v395_v58 = vpop.f32.mrf.mxu1 }
  0xb1   : > { %v376_v1 = vadd.f32 %v879_v20, %v375_v57  ;;  %v396_v2 = vadd.f32 %v879_v20, %v395_v58 }
  0xb2   : > { %v730_v59 = vpack.c.bf16 %v413_v55, %v411_v53  ;;  %v750_v60 = vpack.c.bf16 %v433_v56, %v431_v54 }
  0xb4   : > { %770 = vst [vmem:[%s890_s27 + $0x48] sm:$0xff] %v730_v59  }
  0xb5   : > { %774 = vst [vmem:[%s890_s27 + $0x68] sm:$0xff] %v750_v60  }
  0xb7   : > { %v415_v61 = vpop.f32.mrf.mxu2  ;;  %v435_v62 = vpop.f32.mrf.mxu3 }
  0xb8   : > { %v377_v63 = vpop.f32.mrf.mxu0  ;;  %v397_v0 = vpop.f32.mrf.mxu1  ;;  %v416_v9 = vadd.f32 %v879_v20, %v415_v61  ;;  %v436_v10 = vadd.f32 %v879_v20, %v435_v62 }
  0xb9   : > { %v378_v3 = vadd.f32 %v879_v20, %v377_v63  ;;  %v398_v4 = vadd.f32 %v879_v20, %v397_v0 }
  0xbb   : > { %v695_v5 = vpack.c.bf16 %v378_v3, %v376_v1  ;;  %v715_v6 = vpack.c.bf16 %v398_v4, %v396_v2 }
  0xbd   : > { %763 = vst [vmem:[%s890_s27 + $0x10] sm:$0xff] %v695_v5  }
  0xbe   : > { %767 = vst [vmem:[%s890_s27 + $0x30] sm:$0xff] %v715_v6  }
  0xbf   : > { %v417_v7 = vpop.f32.mrf.mxu2  ;;  %v437_v8 = vpop.f32.mrf.mxu3 }
  0xc0   : > { %v418_v11 = vadd.f32 %v879_v20, %v417_v7  ;;  %v438_v12 = vadd.f32 %v879_v20, %v437_v8  ;;  %v380_v13 = vpop.f32.mrf.mxu0  ;;  %v400_v14 = vpop.f32.mrf.mxu1 }
  0xc1   : > { %v381_v22 = vadd.f32 %v879_v20, %v380_v13  ;;  %v401_v23 = vadd.f32 %v879_v20, %v400_v14 }
  0xc2   : > { %v735_v15 = vpack.c.bf16 %v418_v11, %v416_v9  ;;  %v755_v16 = vpack.c.bf16 %v438_v12, %v436_v10 }
  0xc4   : > { %771 = vst [vmem:[%s890_s27 + $0x50] sm:$0xff] %v735_v15  }
  0xc5   : > { %775 = vst [vmem:[%s890_s27 + $0x70] sm:$0xff] %v755_v16  }
  0xc7   : > { %v420_v17 = vpop.f32.mrf.mxu2  ;;  %v440_v18 = vpop.f32.mrf.mxu3 }
  0xc8   : > { %v382_v19 = vpop.f32.mrf.mxu0  ;;  %v402_v21 = vpop.f32.mrf.mxu1  ;;  %v421_v30 = vadd.f32 %v879_v20, %v420_v17  ;;  %v441_v31 = vadd.f32 %v879_v20, %v440_v18 }
  0xc9   : > { %v383_v24 = vadd.f32 %v879_v20, %v382_v19  ;;  %v403_v25 = vadd.f32 %v879_v20, %v402_v21 }
  0xcb   : > { %v700_v26 = vpack.c.bf16 %v383_v24, %v381_v22  ;;  %v720_v27 = vpack.c.bf16 %v403_v25, %v401_v23 }
  0xcd   : > { %764 = vst [vmem:[%s890_s27 + $0x18] sm:$0xff] %v700_v26  }
  0xce   : > { %768 = vst [vmem:[%s890_s27 + $0x38] sm:$0xff] %v720_v27  }
  0xcf   : > { %v422_v28 = vpop.f32.mrf.mxu2  ;;  %v442_v29 = vpop.f32.mrf.mxu3 }
  0xd0   : > { %v423_v32 = vadd.f32 %v879_v20, %v422_v28  ;;  %v443_v33 = vadd.f32 %v879_v20, %v442_v29 }
  0xd2   : > { %v740_v34 = vpack.c.bf16 %v423_v32, %v421_v30  ;;  %v760_v35 = vpack.c.bf16 %v443_v33, %v441_v31 }
  0xd4   : > { %772 = vst [vmem:[%s890_s27 + $0x58] sm:$0xff] %v740_v34  }
  0xd5   : > { %776 = vst [vmem:[%s890_s27 + $0x78] sm:$0xff] %v760_v35  }
  0xd6 PF: > { %s13_s12 = sadd.s32 1, %s798_s12  }
  0xd7   : > { %p10_p4 = scmp.ge.s32.totalorder %s13_s12, 4  }
  0xd9   :  { %12 = sbr.rel (!%p10_p4) target bundleno = 1 (0x1), region = 62 }

</bundles_post_ra>
